<compile_context>
chip_gen: v7x
topology: tpu7x:2x2x1
jax: 0.10.0
libtpu: 0.0.40
codegen_flags: <defaults>
</compile_context>

<pallas_src>
import math

import jax
import jax.numpy as jnp
from jax.experimental import pallas as pl
from jax.experimental.pallas import tpu as pltpu


def _round_up(v, m):
    return ((v + m - 1) // m) * m


def encoder_kernel(a_ref, x_ref, w_ref, b_ref, alpha_ref, o_ref, acc_ref):
    """One (row-tile i, reduction-tile k) step of H = A_norm @ (X @ W), fused bias+PReLU epilogue."""
    k = pl.program_id(1)

    @pl.when(k == 0)
    def _init():
        acc_ref[...] = jnp.zeros_like(acc_ref)

    # Feature transform of the current k-slab of X: (tk, C_in) @ (C_in, C_hid).
    # Tiny relative to the aggregation matmul; keeps the whole op fused.
    xw_k = jnp.dot(x_ref[...], w_ref[...], preferred_element_type=jnp.float32)

    # Aggregation: (tm, tk) @ (tk, C_hid) in bf16 on the MXU, f32 accumulation.
    acc_ref[...] += jnp.dot(
        a_ref[...], xw_k.astype(a_ref.dtype), preferred_element_type=jnp.float32
    )

    @pl.when(k == pl.num_programs(1) - 1)
    def _epilogue():
        h = acc_ref[...] + b_ref[...]
        o_ref[...] = jnp.where(h > 0, h, alpha_ref[...] * h).astype(o_ref.dtype)


def encoder_forward(a_norm, x, weight, bias, alpha, *, tm=128, tk=128):
    """GCNConv(x) + PReLU given a dense normalized adjacency a_norm [N, N]."""
    n, c_in = x.shape
    c_hid = weight.shape[1]

    n_pad = _round_up(n, math.lcm(tm, tk))
    c_in_pad = _round_up(c_in, 128)
    c_hid_pad = _round_up(c_hid, 128)

    # Pad to (8,128)-aligned, lane-dense shapes; cast matmul operands to bf16
    # (accumulation stays f32 inside the kernel). Zero-padding is exact:
    # padded rows/cols contribute nothing and are sliced off at the end.
    a_p = jnp.zeros((n_pad, n_pad), jnp.bfloat16).at[:n, :n].set(
        a_norm.astype(jnp.bfloat16))
    x_p = jnp.zeros((n_pad, c_in_pad), jnp.bfloat16).at[:n, :c_in].set(
        x.astype(jnp.bfloat16))
    w_p = jnp.zeros((c_in_pad, c_hid_pad), jnp.bfloat16).at[:c_in, :c_hid].set(
        weight.astype(jnp.bfloat16))
    b_p = jnp.zeros((1, c_hid_pad), jnp.float32).at[:, :c_hid].set(
        bias.reshape(1, c_hid))
    al_p = jnp.zeros((1, c_hid_pad), jnp.float32).at[:, :c_hid].set(
        alpha.reshape(1, c_hid))

    grid_i = n_pad // tm
    grid_k = n_pad // tk

    flops = (2 * grid_i * n_pad * c_in_pad * c_hid_pad   # per-row-tile k-slab X@W
             + 2 * n_pad * n_pad * c_hid_pad)            # A_norm @ XW
    bytes_accessed = (n_pad * n_pad * 2                  # A (bf16)
                      + grid_i * n_pad * c_in_pad * 2    # X re-streamed per row tile
                      + c_in_pad * c_hid_pad * 2         # W
                      + n_pad * c_hid_pad * 4)           # output (f32)

    # TODO(synk): for large real graphs, add block-sparse skipping of all-zero
    # A_norm tiles via pltpu.PrefetchScalarGridSpec(num_scalar_prefetch=...) with
    # a per-(i,k) block-nonzero table in SMEM and @pl.when guards.
    out_p = pl.pallas_call(
        encoder_kernel,
        out_shape=jax.ShapeDtypeStruct((n_pad, c_hid_pad), jnp.float32),
        grid_spec=pltpu.PrefetchScalarGridSpec(
            num_scalar_prefetch=0,
            grid=(grid_i, grid_k),
            in_specs=[
                pl.BlockSpec((tm, tk), lambda i, k: (i, k)),               # A tile
                pl.BlockSpec((tk, c_in_pad), lambda i, k: (k, 0)),         # X k-slab
                pl.BlockSpec((c_in_pad, c_hid_pad), lambda i, k: (0, 0)),  # W (resident)
                pl.BlockSpec((1, c_hid_pad), lambda i, k: (0, 0)),         # bias
                pl.BlockSpec((1, c_hid_pad), lambda i, k: (0, 0)),         # alpha
            ],
            out_specs=pl.BlockSpec((tm, c_hid_pad), lambda i, k: (i, 0)),
            scratch_shapes=[pltpu.VMEM((tm, c_hid_pad), jnp.float32)],
        ),
        compiler_params=pltpu.CompilerParams(
            dimension_semantics=("parallel", "arbitrary"),
            vmem_limit_bytes=32 * 1024 * 1024,
        ),
        cost_estimate=pl.CostEstimate(
            flops=flops, transcendentals=0, bytes_accessed=bytes_accessed),
    )(a_p, x_p, w_p, b_p, al_p)

    return out_p[:n, :c_hid]


def build_gcn_norm_adj(edge_index, num_nodes):
    """Dense D^{-1/2} (A + I) D^{-1/2} from edge_index [2, E] (plain-JAX glue).

    Uses scatter-add so duplicate edges accumulate (matches PyG gcn_norm add
    semantics for multigraphs).
    """
    src, dst = edge_index[0], edge_index[1]
    adj = jnp.zeros((num_nodes, num_nodes), jnp.float32)
    # GCNConv propagates src -> dst; dense form accumulates A[dst, src] += 1.
    adj = adj.at[dst, src].add(1.0)
    adj = adj + jnp.eye(num_nodes, dtype=jnp.float32)  # add self loops
    deg = adj.sum(axis=1)
    dinv = jnp.where(deg > 0, 1.0 / jnp.sqrt(deg), 0.0)
    return dinv[:, None] * adj * dinv[None, :]


if __name__ == "__main__":
    key = jax.random.PRNGKey(0)
    k_x, k_w, k_b = jax.random.split(key, 3)

    num_nodes = 256
    in_channels = 16
    hidden_channels = 32

    # Node features
    x = jax.random.normal(k_x, (num_nodes, in_channels), dtype=jnp.float32)

    # Small deterministic graph: ring (both directions)
    idx = jnp.arange(num_nodes)
    src = jnp.concatenate([idx, (idx + 1) % num_nodes])
    dst = jnp.concatenate([(idx + 1) % num_nodes, idx])
    edge_index = jnp.stack([src, dst])  # [2, E]

    # Parameters (deterministic synthetic init; shapes from GCNConv / PReLU)
    weight = jax.random.normal(k_w, (in_channels, hidden_channels), jnp.float32) * 0.1
    bias = jax.random.normal(k_b, (hidden_channels,), jnp.float32) * 0.1
    alpha = jnp.full((hidden_channels,), 0.25, jnp.float32)  # PReLU default init

    a_norm = build_gcn_norm_adj(edge_index, num_nodes)

    out = encoder_forward(a_norm, x, weight, bias, alpha)
    jax.block_until_ready(out)

    # Reference following the same bf16-input / f32-accumulate quantization path.
    a_b = a_norm.astype(jnp.bfloat16).astype(jnp.float32)
    x_b = x.astype(jnp.bfloat16).astype(jnp.float32)
    w_b = weight.astype(jnp.bfloat16).astype(jnp.float32)
    xw = (x_b @ w_b).astype(jnp.bfloat16).astype(jnp.float32)
    ref_h = a_b @ xw + bias[None, :]
    ref = jnp.where(ref_h > 0, ref_h, alpha[None, :] * ref_h)
    assert jnp.allclose(out, ref, atol=1e-2, rtol=1e-2), float(
        jnp.max(jnp.abs(out - ref)))

    print("KERNEL_OK")
</pallas_src>

<mosaic_0001>
module attributes {stable_mosaic.version = 11 : i64} {
  func.func @encoder_kernel(%arg0: i32, %arg1: i32, %arg2: memref<128x128xbf16, #tpu.memory_space<vmem>>, %arg3: memref<128x128xbf16, #tpu.memory_space<vmem>>, %arg4: memref<128x128xbf16, #tpu.memory_space<vmem>>, %arg5: memref<1x128xf32, #tpu.memory_space<vmem>>, %arg6: memref<1x128xf32, #tpu.memory_space<vmem>>, %arg7: memref<128x128xf32, #tpu.memory_space<vmem>>, %arg8: memref<128x128xf32, #tpu.memory_space<vmem>>) attributes {dimension_semantics = [#tpu.dimension_semantics<parallel>, #tpu.dimension_semantics<arbitrary>], iteration_bounds = array<i64: 2, 2>, scalar_prefetch = 0 : i64, scratch_operands = 1 : i64, tpu.core_type = #tpu.core_type<tc>, window_params = [{transform_indices = @transform_0, window_bounds = array<i64: 128, 128>}, {transform_indices = @transform_1, window_bounds = array<i64: 128, 128>}, {pipeline_mode = #tpu.pipeline_mode<synchronous>, transform_indices = @transform_2, window_bounds = array<i64: 128, 128>}, {pipeline_mode = #tpu.pipeline_mode<synchronous>, transform_indices = @transform_3, window_bounds = array<i64: 1, 128>}, {pipeline_mode = #tpu.pipeline_mode<synchronous>, transform_indices = @transform_4, window_bounds = array<i64: 1, 128>}, {transform_indices = @transform_5, window_bounds = array<i64: 128, 128>}]} {
    %c0_i32 = arith.constant 0 : i32
    %0 = arith.cmpi eq, %arg1, %c0_i32 : i32
    %1 = arith.extui %0 : i1 to i32
    %c0_i32_0 = arith.constant 0 : i32
    %2 = arith.cmpi ne, %1, %c0_i32_0 : i32
    scf.if %2 {
      %cst_12 = arith.constant 0.000000e+00 : f32
      %15 = vector.broadcast %cst_12 : f32 to vector<128x128xf32>
      %c0_13 = arith.constant 0 : index
      %c0_14 = arith.constant 0 : index
      %16 = vector.load %arg8[%c0_13, %c0_14] : memref<128x128xf32, #tpu.memory_space<vmem>>, vector<128x128xf32>
      tpu.vector_store %arg8[%c0_13, %c0_14], %15 {strides = array<i32>} : memref<128x128xf32, #tpu.memory_space<vmem>>, vector<128x128xf32>,
    } else {
    }
    %c0 = arith.constant 0 : index
    %c0_1 = arith.constant 0 : index
    %3 = vector.load %arg3[%c0, %c0_1] : memref<128x128xbf16, #tpu.memory_space<vmem>>, vector<128x128xbf16>
    %c0_2 = arith.constant 0 : index
    %c0_3 = arith.constant 0 : index
    %4 = vector.load %arg4[%c0_2, %c0_3] : memref<128x128xbf16, #tpu.memory_space<vmem>>, vector<128x128xbf16>
    %cst = arith.constant dense<0.000000e+00> : vector<128x128xf32>
    %5 = tpu.matmul %3, %4, %cst {dimension_numbers = #tpu.dot_dimension_numbers<[1], [0], [0], [1], [0, 0, 1, 1], [], []>} : vector<128x128xbf16>, vector<128x128xbf16>, vector<128x128xf32> -> vector<128x128xf32>
    %c0_4 = arith.constant 0 : index
    %c0_5 = arith.constant 0 : index
    %6 = vector.load %arg8[%c0_4, %c0_5] : memref<128x128xf32, #tpu.memory_space<vmem>>, vector<128x128xf32>
    %c0_6 = arith.constant 0 : index
    %c0_7 = arith.constant 0 : index
    %7 = vector.load %arg2[%c0_6, %c0_7] : memref<128x128xbf16, #tpu.memory_space<vmem>>, vector<128x128xbf16>
    %8 = arith.truncf %5 : vector<128x128xf32> to vector<128x128xbf16>
    %cst_8 = arith.constant dense<0.000000e+00> : vector<128x128xf32>
    %9 = tpu.matmul %7, %8, %cst_8 {dimension_numbers = #tpu.dot_dimension_numbers<[1], [0], [0], [1], [0, 0, 1, 1], [], []>} : vector<128x128xbf16>, vector<128x128xbf16>, vector<128x128xf32> -> vector<128x128xf32>
    %10 = arith.addf %6, %9 : vector<128x128xf32>
    %c0_9 = arith.constant 0 : index
    %c0_10 = arith.constant 0 : index
    %11 = vector.load %arg8[%c0_9, %c0_10] : memref<128x128xf32, #tpu.memory_space<vmem>>, vector<128x128xf32>
    tpu.vector_store %arg8[%c0_9, %c0_10], %10 {strides = array<i32>} : memref<128x128xf32, #tpu.memory_space<vmem>>, vector<128x128xf32>,
    %c1_i32 = arith.constant 1 : i32
    %12 = arith.cmpi eq, %arg1, %c1_i32 : i32
    %13 = arith.extui %12 : i1 to i32
    %c0_i32_11 = arith.constant 0 : i32
    %14 = arith.cmpi ne, %13, %c0_i32_11 : i32
    scf.if %14 {
      %c0_12 = arith.constant 0 : index
      %c0_13 = arith.constant 0 : index
      %15 = vector.load %arg8[%c0_12, %c0_13] : memref<128x128xf32, #tpu.memory_space<vmem>>, vector<128x128xf32>
      %c0_14 = arith.constant 0 : index
      %c0_15 = arith.constant 0 : index
      %16 = vector.load %arg5[%c0_14, %c0_15] : memref<1x128xf32, #tpu.memory_space<vmem>>, vector<1x128xf32>
      %17 = vector.broadcast %16 : vector<1x128xf32> to vector<128x128xf32>
      %18 = arith.addf %15, %17 : vector<128x128xf32>
      %cst_16 = arith.constant 0.000000e+00 : f32
      %19 = vector.broadcast %cst_16 : f32 to vector<128x128xf32>
      %20 = arith.cmpf ogt, %18, %19 : vector<128x128xf32>
      %c0_17 = arith.constant 0 : index
      %c0_18 = arith.constant 0 : index
      %21 = vector.load %arg6[%c0_17, %c0_18] : memref<1x128xf32, #tpu.memory_space<vmem>>, vector<1x128xf32>
      %22 = vector.broadcast %21 : vector<1x128xf32> to vector<128x128xf32>
      %23 = arith.mulf %22, %18 : vector<128x128xf32>
      %24 = arith.select %20, %18, %23 : vector<128x128xi1>, vector<128x128xf32>
      %c0_19 = arith.constant 0 : index
      %c0_20 = arith.constant 0 : index
      %25 = vector.load %arg7[%c0_19, %c0_20] : memref<128x128xf32, #tpu.memory_space<vmem>>, vector<128x128xf32>
      tpu.vector_store %arg7[%c0_19, %c0_20], %24 {strides = array<i32>} : memref<128x128xf32, #tpu.memory_space<vmem>>, vector<128x128xf32>,
    } else {
    }
    return
  }
  func.func @transform_0(%arg0: i32, %arg1: i32) -> (i32, i32) {
    %c0_i32 = arith.constant 0 : i32
    return %arg0, %arg1 : i32, i32
  }
  func.func @transform_1(%arg0: i32, %arg1: i32) -> (i32, i32) {
    %c0_i32 = arith.constant 0 : i32
    %c0_i32_0 = arith.constant 0 : i32
    return %arg1, %c0_i32 : i32, i32
  }
  func.func @transform_2(%arg0: i32, %arg1: i32) -> (i32, i32) {
    %c0_i32 = arith.constant 0 : i32
    %c0_i32_0 = arith.constant 0 : i32
    %c0_i32_1 = arith.constant 0 : i32
    return %c0_i32, %c0_i32_0 : i32, i32
  }
  func.func @transform_3(%arg0: i32, %arg1: i32) -> (i32, i32) {
    %c0_i32 = arith.constant 0 : i32
    %c0_i32_0 = arith.constant 0 : i32
    %c0_i32_1 = arith.constant 0 : i32
    return %c0_i32, %c0_i32_0 : i32, i32
  }
  func.func @transform_4(%arg0: i32, %arg1: i32) -> (i32, i32) {
    %c0_i32 = arith.constant 0 : i32
    %c0_i32_0 = arith.constant 0 : i32
    %c0_i32_1 = arith.constant 0 : i32
    return %c0_i32, %c0_i32_0 : i32, i32
  }
  func.func @transform_5(%arg0: i32, %arg1: i32) -> (i32, i32) {
    %c0_i32 = arith.constant 0 : i32
    %c0_i32_0 = arith.constant 0 : i32
    return %arg0, %c0_i32 : i32, i32
  }
}

</mosaic_0001>

<bundles_post_ra>
// kernel: tpu_custom_call.1
= control target key start
LH: loop header
LB: loop body
LE: loop exit
PB: predicated region body
PF: predicated region fallthrough
CT: control target
= control target key end

     0   :  { %s2093_s0 = inlined_call_operand.hbm [shape: bf16[256,256], index: 0, kind: input, shape index: {}]   ;;  %s2094_s1 = inlined_call_operand.hbm [shape: bf16[256,128], index: 1, kind: input, shape index: {}]   ;;  %s2095_s2 = inlined_call_operand.hbm [shape: bf16[128,128], index: 2, kind: input, shape index: {}]   ;;  %s2096_s3 = inlined_call_operand.vmem [shape: f32[1,128], index: 3, kind: input, shape index: {}]   ;;  %s2097_s4 = inlined_call_operand.vmem [shape: f32[1,128], index: 4, kind: input, shape index: {}]   ;;  %s2098_s5 = inlined_call_operand.hbm [shape: f32[256,128], index: 5, kind: output, shape index: {}]  }
   0x1   :  { %2122 = sst [smem:[#allocation23_spill]] %s2095_s2 }
   0x2   :  { %2123 = sst [smem:[#allocation24_spill]] %s2096_s3 }
   0x3   :  { %2124 = sst [smem:[#allocation25_spill]] %s2097_s4 }
   0x4   :  { %2125 = sst [smem:[#allocation26_spill]] %s2098_s5 }
   0x5   :  { %10 = vsyncpa [#allocation4], 0 }
   0x6   :  { %12 = vsyncpa [#allocation4 + $0x1], 0 }
   0x7   :  { %13 = vsyncpa [#allocation7], 0 }
   0x8   :  { %15 = vsyncpa [#allocation7 + $0x1], 0 }
   0x9   :  { %16 = vsyncpa [#allocation5], 0 }
   0xa   :  { %18 = vsyncpa [#allocation5 + $0x1], 0  ;;  %s1630_s18 = smov 0   ;;  %s1632_s19 = smov 0  }
   0xb   :  { %s1634_s20 = smov 0   ;;  %s1636_s21 = smov 0  }
   0xc   :  { %s1638_s22 = smov 0   ;;  %s1640_s23 = smov 0  }
   0xd   :  { %s1642_s24 = smov 0   ;;  %s1644_s25 = smov 0  }
   0xe   :  { %s1646_s26 = smov 0   ;;  %s1648_s27 = smov 0  }
   0xf   :  { %s1650_s28 = smov 0   ;;  %s1652_s29 = smov 0  }
  0x10   :  { %s1654_s30 = smov 0   ;;  %s1656_s6 = smov 0  }
  0x11 LB: > { %2126 = sst [smem:[#allocation14_spill]] %s1536_s18  ;;  %s1697_s7 = sadd.s32 4294967295, %s1588_s6   ;;  %s1588_s6 = sphi %s1656_s6, %s24_s6   ;;  %s1584_s30 = sphi %s1654_s30, %s2186_s30   ;;  %s1580_s29 = sphi %s1652_s29, %s2185_s29   ;;  %s1576_s28 = sphi %s1650_s28, %s2184_s28   ;;  %s1572_s27 = sphi %s1648_s27, %s2183_s27   ;;  %s1568_s26 = sphi %s1646_s26, %s2182_s26   ;;  %s1564_s25 = sphi %s1644_s25, %s2181_s25   ;;  %s1560_s24 = sphi %s1642_s24, %s2180_s24   ;;  %s1556_s23 = sphi %s1640_s23, %s2179_s23   ;;  %s1552_s22 = sphi %s1638_s22, %s2178_s22   ;;  %s1548_s21 = sphi %s1636_s21, %s2177_s21   ;;  %s1544_s20 = sphi %s1634_s20, %s2176_s20   ;;  %s1540_s19 = sphi %s1632_s19, %s2175_s19   ;;  %s1536_s18 = sphi %s1630_s18, %s2172_s18  }
  0x12   : > { %2127 = sst [smem:[#allocation15_spill]] %s1540_s19  ;;  %s1026_s8 = sadd.s32 4294967294, %s1588_s6  }
  0x13   : > { %2128 = sst [smem:[#allocation16_spill]] %s1572_s27  ;;  %p58_p0 = scmp.ne.s32.totalorder %s1564_s25, %s1560_s24 }
  0x14   : > { %2129 = sst [smem:[#allocation17_spill]] %s1576_s28  ;;  %p2102_p1 = scmp.eq.s32.totalorder %s1697_s7, 0 }
  0x15   : > { %2130 = sst [smem:[#allocation18_spill]] %s1697_s7  ;;  %p84_p2 = scmp.ne.s32.totalorder %s1552_s22, %s1548_s21 }
  0x16   : > { %p1706_p3 = por %p2102_p1, %p58_p0  ;;  %p170_p4 = scmp.ne.s32.totalorder %s1544_s20, %s1540_s19 }
  0x17   : > { %p1714_p5 = por %p84_p2, %p2102_p1  ;;  %p171_p6 = scmp.eq.s32.totalorder %s1697_s7, 3 }
  0x18   : > { %s2131_s10 = scalar_select %p1706_p3, 1, 0 }
  0x19   : > { %s2132_s11 = scalar_select %p1714_p5, 1, 0 }
  0x1a   : > { %p176_p7 = scmp.ne.s32.totalorder %s1540_s19, %s1536_s18  ;;  %p177_p8 = scmp.eq.s32.totalorder %s1026_s8, 3 }
  0x1b   : > { %2133 = sst [smem:[#allocation19_spill]] %s2132_s11  ;;  %p1721_p9 = por %p171_p6, %p170_p4 }
  0x1c   : > { %p1027_p10 = scmp.ge.s32.totalorder %s1588_s6, 1  ;;  %p1726_p11 = por %p177_p8, %p176_p7 }
  0x1d   : > { %s2134_s12 = scalar_select %p1721_p9, 1, 0 }
  0x1e   : > { %s2136_s13 = scalar_select %p1726_p11, 1, 0 }
  0x1f   : > { %2135 = sst [smem:[#allocation20_spill]] %s2134_s12  ;;  %p184_p12 = scmp.lt.s32.totalorder %s1588_s6, 5 }
  0x20   : > { %2137 = sst [smem:[#allocation21_spill]] %s2136_s13  ;;  %s1590_s15 = smov [#allocation8]  }
  0x21   : > { %p1731_p13 = pnand %p1027_p10, %p184_p12  ;;  %s196_s16 = sshll.u32 %s1590_s15, 4  ;;  %s197_s16 = int_to_ptr.vmem [resolvable:$true] %s196_s16 }
  0x22   : > { %s2140_s2 = sld [smem:[#allocation23_spill]] }
  0x23   : > { %s2138_s14 = scalar_select %p1731_p13, 1, 0 }
  0x24   : > { %p1184_p0 = pneg %p1731_p13 }
  0x26   : > { %p1739_p2 = pnand %p1184_p0, %p2102_p1 }
  0x28   : > { %s1346_s8 = scalar_lea.hbm %s2140_s2, 1024  ;;  %p1348_p6 = pneg %p1739_p2 }
  0x29   : > { %p1347_p4 = scmp.ne.s32.totalorder %s2140_s2, %s1346_s8  ;;  %p1353_p10 = scmp.lt.u32.totalorder %s1346_s8, %s2140_s2 }
  0x2b   : > { %p1349_p7 = pnand %p1348_p6, %p1347_p4 }
  0x2d   : > { %p1350_p8 = pneg %p1349_p7 }
  0x2f   : > { %p1355_p12 = pnand %p1353_p10, %p1350_p8 }
  0x31   : > { %1358 = shalt.err (!%p1355_p12)
}
  0x32   : > { %s1359_s5 = scalar_lea.vmem %s197_s16, 1024  ;;  %p1367_p9 = scmp.lt.s32.totalorder %s197_s16, %s197_s16 }
  0x33   : > { %p1360_p0 = scmp.ne.s32.totalorder %s197_s16, %s1359_s5  ;;  %p1368_p5 = scmp.lt.s32.totalorder %s1359_s5, %s1359_s5 }
  0x35   : > { %p1362_p1 = pnand %p1360_p0, %p1348_p6  ;;  %p1369_p3 = por %p1368_p5, %p1367_p9 }
  0x37   : > { %p1363_p11 = pneg %p1362_p1 }
  0x39   : > { %p1370_p13 = pnand %p1369_p3, %p1363_p11 }
  0x3b   : > { %1373 = shalt.err (!%p1370_p13)
}
  0x3c   : > { %s2107_s9 = smov 64   ;;  %s2109_s18 = smov 4  }
  0x3d   : > { %1187 = dma.hbm_to_vmem [thread:$0]  (!%p1739_p2), %s2140_s2, 1024, %s197_s16, [#allocation7], %s2107_s9, %s2107_s9, %s2109_s18  }
  0x3e   : > { %s33_s21 = sadd.s32 1, %s1580_s29  ;;  %s36_s24 = sadd.s32 1, %s1584_s30 }
  0x3f   : > { %p34_p1 = scmp.ge.s32.totalorder %s33_s21, 2  ;;  %s45_s8 = sadd.s32 1, %s1568_s26 }
  0x40   : > { %p52_p3 = scmp.ne.s32.totalorder %s1568_s26, %s1564_s25  ;;  %p2121_p5 = scmp.eq.s32.totalorder %s1588_s6, 0 }
  0x41   : > { %s2188_s21 = smov (%p34_p1, %s33_s21), 0  ;;  %s2190_s24 = smov (!%p34_p1, %s36_s24), %s1584_s30 }
  0x42   : > { %2141 = sst [smem:[#allocation22_spill]] %s2188_s21  ;;  %s1772_s17 = ssub.s32 %s1580_s29, %s2188_s21 }
  0x43   : > { %p38_p9 = scmp.ge.s32.totalorder %s2190_s24, 2  ;;  %p69_p11 = scmp.eq.s32.totalorder %s1772_s17, 0 }
  0x44   : > { %p1778_p13 = por %p2121_p5, %p52_p3  ;;  %p2120_p2 = scmp.lt.s32.totalorder %s1588_s6, 4 }
  0x45   : > { %s2192_s24 = smov (%p38_p9, %s2190_s24), 0  ;;  %s216_s15 = sand.u32 1, %s1568_s26  }
  0x46   : > { %s1075_s5 = sshll.u32 %s1584_s30, 5  ;;  %s40_s13 = ssub.s32 %s1584_s30, %s2192_s24 }
  0x47   : > { %s42_s9 = sor.u32 %s1772_s17, %s40_s13  ;;  %p158_p4 = scmp.eq.s32.totalorder %s40_s13, 0 }
  0x48   : > { %p43_p6 = scmp.eq.s32.totalorder %s42_s9, 0  ;;  %s1030_s18 = sshll.u32 %s216_s15, 6 }
  0x49   : > { %s2143_s2 = sadd.s32 1, %s1544_s20  ;;  %s226_s28 = sadd.s32 %s1580_s29, %s1075_s5 }
  0x4a   : > { %s1793_s21 = scalar_select %p158_p4, %s1544_s20, %s2143_s2  }
  0x4b   : > { %s1796_s12 = scalar_select %p43_p6, %s1568_s26, %s45_s8  }
  0x4c   : > { %s1033_s4 = sshll.u32 %s226_s28, 6  ;;  %s220_s3 = scalar_lea.vmem [#allocation3], %s1030_s18 }
  0x4d   : > { %s229_s27 = sshll.u32 %s220_s3, 4  ;;  %s1802_s7 = scalar_lea.hbm %s2093_s0, %s1033_s4  ;;  %s1804_s27 = int_to_ptr.vmem [resolvable:$true] %s229_s27 }
  0x4e   : > { %p1810_p7 = pnand %p2120_p2, %p1778_p13  ;;  %s239_s3 = sand.u32 1, %s1588_s6  }
  0x4f   : > { %s1815_s28 = scalar_lea.sflag [#allocation4], %s216_s15  ;;  %s1374_s19 = scalar_lea.hbm %s1802_s7, 1024 }
  0x50   : > { %p1375_p8 = scmp.ne.s32.totalorder %s1802_s7, %s1374_s19  ;;  %p1376_p10 = pneg %p1810_p7 }
  0x51   : > { %s1379_s9 = scalar_lea.hbm %s2093_s0, 4096  ;;  %p1380_p1 = scmp.lt.u32.totalorder %s1802_s7, %s2093_s0 }
  0x52   : > { %p1377_p12 = pnand %p1376_p10, %p1375_p8  ;;  %p1381_p3 = scmp.lt.u32.totalorder %s1379_s9, %s1374_s19 }
  0x53   : > { %p1383_p13 = scmp.lt.u32.totalorder %s1374_s19, %s1802_s7 }
  0x54   : > { %p1378_p0 = pneg %p1377_p12  ;;  %p1382_p9 = por %p1381_p3, %p1380_p1 }
  0x56   : > { %p1384_p4 = por %p1383_p13, %p1382_p9 }
  0x58   : > { %p1385_p6 = pnand %p1384_p4, %p1378_p0 }
  0x5a   : > { %1388 = shalt.err (!%p1385_p6)
}
  0x5b   : > { %s1389_s16 = scalar_lea.vmem %s1804_s27, 1024  ;;  %s1593_s15 = smov [#allocation3]  }
  0x5c   : > { %p1390_p8 = scmp.ne.s32.totalorder %s1804_s27, %s1389_s16  ;;  %s1394_s5 = sshll.u32 %s1593_s15, 4  ;;  %s1395_s5 = int_to_ptr.vmem [resolvable:$false] %s1394_s5 }
  0x5d   : > { %s1396_s13 = scalar_lea.vmem %s1395_s5, 2048  ;;  %p1397_p5 = scmp.lt.s32.totalorder %s1804_s27, %s1395_s5 }
  0x5e   : > { %p1392_p12 = pnand %p1390_p8, %p1376_p10  ;;  %p1398_p1 = scmp.lt.s32.totalorder %s1396_s13, %s1389_s16 }
  0x60   : > { %p1393_p2 = pneg %p1392_p12  ;;  %p1399_p3 = por %p1398_p1, %p1397_p5 }
  0x62   : > { %p1400_p9 = pnand %p1399_p3, %p1393_p2 }
  0x64   : > { %1403 = shalt.err (!%p1400_p9)
}
  0x65   : > { %s1594_s19 = smov 128   ;;  %s2145_s4 = smov 4  }
  0x66   : > { %s2146_s11 = smov 64   ;;  %s71_s9 = sadd.s32 1, %s1556_s23 }
  0x67   : > { %1191 = dma.hbm_to_vmem [thread:$0]  (!%p1810_p7), %s1802_s7, 1024, %s1804_s27, %s1815_s28, %s1594_s19, %s2146_s11, %s2145_s4  }
  0x68   : > { %p78_p5 = scmp.ne.s32.totalorder %s1556_s23, %s1552_s22  ;;  %p2147_p2 = scmp.eq.s32.totalorder %s1588_s6, 0 }
  0x69   : > { %s1851_s2 = scalar_select %p69_p11, %s1556_s23, %s71_s9  }
  0x6a   : > { %p80_p10 = por %p78_p5, %p2147_p2  ;;  %s241_s18 = sand.u32 1, %s1556_s23  }
  0x6b   : > { %s1076_s8 = sshll.u32 %s1580_s29, 10  ;;  %s1034_s16 = sshll.u32 %s241_s18, 6 }
  0x6c   : > { %s1860_s13 = scalar_lea.hbm %s2094_s1, %s1076_s8  ;;  %p2148_p0 = scmp.lt.s32.totalorder %s1588_s6, 4 }
  0x6d   : > { %s243_s7 = scalar_lea.vmem [#allocation6], %s1034_s16  ;;  %s1872_s28 = scalar_lea.sflag [#allocation7], %s239_s3 }
  0x6e   : > { %p1864_p7 = pnand %p2148_p0, %p80_p10  ;;  %s250_s17 = sshll.u32 %s243_s7, 4  ;;  %s1868_s17 = int_to_ptr.vmem [resolvable:$true] %s250_s17 }
  0x6f   : > { %s1404_s19 = scalar_lea.hbm %s1860_s13, 1024  ;;  %s1409_s8 = scalar_lea.hbm %s2094_s1, 2048 }
  0x70   : > { %p1405_p11 = scmp.ne.s32.totalorder %s1860_s13, %s1404_s19  ;;  %p1406_p13 = pneg %p1864_p7 }
  0x71   : > { %p1410_p8 = scmp.lt.u32.totalorder %s1860_s13, %s2094_s1  ;;  %p1411_p12 = scmp.lt.u32.totalorder %s1409_s8, %s1404_s19 }
  0x72   : > { %p1407_p4 = pnand %p1406_p13, %p1405_p11  ;;  %p1413_p3 = scmp.lt.u32.totalorder %s1404_s19, %s1860_s13 }
  0x73   : > { %p1412_p1 = por %p1411_p12, %p1410_p8 }
  0x74   : > { %p1408_p6 = pneg %p1407_p4 }
  0x75   : > { %p1414_p9 = por %p1413_p3, %p1412_p1 }
  0x77   : > { %p1415_p5 = pnand %p1414_p9, %p1408_p6 }
  0x79   : > { %1418 = shalt.err (!%p1415_p5)
}
  0x7a   : > { %s1419_s3 = scalar_lea.vmem %s1868_s17, 1024  ;;  %s1595_s5 = smov [#allocation6]  }
  0x7b   : > { %p1420_p2 = scmp.ne.s32.totalorder %s1868_s17, %s1419_s3  ;;  %s1424_s7 = sshll.u32 %s1595_s5, 4  ;;  %s1425_s7 = int_to_ptr.vmem [resolvable:$false] %s1424_s7 }
  0x7c   : > { %s1426_s9 = scalar_lea.vmem %s1425_s7, 2048  ;;  %p1427_p11 = scmp.lt.s32.totalorder %s1868_s17, %s1425_s7 }
  0x7d   : > { %p1422_p10 = pnand %p1420_p2, %p1406_p13  ;;  %p1428_p4 = scmp.lt.s32.totalorder %s1426_s9, %s1419_s3 }
  0x7f   : > { %p1423_p0 = pneg %p1422_p10  ;;  %p1429_p8 = por %p1428_p4, %p1427_p11 }
  0x81   : > { %p1430_p12 = pnand %p1429_p8, %p1423_p0 }
  0x83   : > { %1433 = shalt.err (!%p1430_p12)
}
  0x84   : > { %1194 = dma.hbm_to_vmem [thread:$0]  (!%p1864_p7), %s1860_s13, 1024, %s1868_s17, %s1872_s28, %s2146_s11, %s2146_s11, %s2145_s4  }
  0x85   : > { %p2150_p13 = scmp.ne.s32.totalorder %s2138_s14, 0 }
  0x86   : > { %s264_s19 = sand.u32 (!%p2150_p13), 1, %s1564_s25   ;;  %p2151_p6 = scmp.ne.s32.totalorder (!%p2150_p13), %s2131_s10, 0 }
  0x87   : > { %262 = sbr.rel (%p2150_p13) target bundleno = 736 (0x2e0), region = 40  ;;  %s1038_s18 = sshll.u32 (!%p2150_p13), %s264_s19, 6 }
  0x88   : > { %s265_s8 = scalar_lea.sflag (!%p2150_p13), [#allocation4], %s264_s19  ;;  %s1906_s15 = scalar_lea.vmem (!%p2150_p13), [#allocation3], %s1038_s18 }
  0x8e   : > { %1519 = dma.done.wait (%p2151_p6), %s265_s8, 1024  }
  0x8f   : > { %1521 = vsyncadd (%p2151_p6), %s265_s8, 4294966272  ;;  %s2152_s27 = sld [smem:[#allocation18_spill]]  ;;  %s2153_s16 = sld [smem:[#allocation19_spill]] }
  0x90   : > { %s275_s4 = sand.u32 1, %s1552_s22  }
  0x91   : > { %s1039_s11 = sshll.u32 %s275_s4, 6 }
  0x92   : > { %s1914_s13 = scalar_lea.vmem [#allocation6], %s1039_s11 }
  0x95   : > { %s273_s3 = sand.u32 1, %s2152_s27   ;;  %p2154_p7 = scmp.ne.s32.totalorder %s2153_s16, 0 }
  0x96   : > { %s274_s14 = scalar_lea.sflag [#allocation7], %s273_s3 }
  0x97   : > { %1523 = dma.done.wait (%p2154_p7), %s274_s14, 1024  }
  0x98   : > { %1525 = vsyncadd (%p2154_p7), %s274_s14, 4294966272  ;;  %p2155_p1 = scmp.eq.s32.totalorder %s2152_s27, 0 }
  0x9a   : > { %1527 = dma.done.wait (%p2155_p1), [#allocation7], 1024   ;;  %p2156_p3 = pmov %p2155_p1 }
  0x9b   : > { %s2157_s10 = sld [smem:[#allocation15_spill]]  ;;  %s2158_s7 = sld [smem:[#allocation16_spill]] }
  0x9c   : > { %1529 = vsyncadd (%p2156_p3), [#allocation7], 4294966272 }
  0xa1   : > { %s310_s17 = sand.u32 1, %s2157_s10   ;;  %p1042_p9 = scmp.ne.s32.totalorder %s2158_s7, 0 }
  0xa2   : > { %s1041_s28 = sshll.u32 %s310_s17, 7  ;;  %v1596_v0 = vmov (!%p1042_p9), 0.0  }
  0xa3   : > { %s1927_s5 = scalar_lea.vmem [#allocation9], %s1041_s28  ;;  %320 = sbr.rel (%p1042_p9) target bundleno = 171 (0xab), region = 56  ;;  %321 = vst [vmem:[#allocation2] sm:$0xff] (!%p1042_p9), %v1596_v0  ;;  %322 = vst [vmem:[#allocation2 + $0x8] sm:$0xff] (!%p1042_p9), %v1596_v0 }
  0xa4   : > { %323 = vst [vmem:[#allocation2 + $0x10] sm:$0xff] (!%p1042_p9), %v1596_v0  ;;  %324 = vst [vmem:[#allocation2 + $0x18] sm:$0xff] (!%p1042_p9), %v1596_v0 }
  0xa5   : > { %325 = vst [vmem:[#allocation2 + $0x20] sm:$0xff] (!%p1042_p9), %v1596_v0  ;;  %326 = vst [vmem:[#allocation2 + $0x28] sm:$0xff] (!%p1042_p9), %v1596_v0 }
  0xa6   : > { %327 = vst [vmem:[#allocation2 + $0x30] sm:$0xff] (!%p1042_p9), %v1596_v0  ;;  %328 = vst [vmem:[#allocation2 + $0x38] sm:$0xff] (!%p1042_p9), %v1596_v0 }
  0xa7   : > { %329 = vst [vmem:[#allocation2 + $0x40] sm:$0xff] (!%p1042_p9), %v1596_v0  ;;  %330 = vst [vmem:[#allocation2 + $0x48] sm:$0xff] (!%p1042_p9), %v1596_v0 }
  0xa8   : > { %331 = vst [vmem:[#allocation2 + $0x50] sm:$0xff] (!%p1042_p9), %v1596_v0  ;;  %332 = vst [vmem:[#allocation2 + $0x58] sm:$0xff] (!%p1042_p9), %v1596_v0 }
  0xa9   : > { %333 = vst [vmem:[#allocation2 + $0x60] sm:$0xff] (!%p1042_p9), %v1596_v0  ;;  %334 = vst [vmem:[#allocation2 + $0x68] sm:$0xff] (!%p1042_p9), %v1596_v0 }
  0xaa   : > { %335 = vst [vmem:[#allocation2 + $0x70] sm:$0xff] %v1596_v0  ;;  %336 = vst [vmem:[#allocation2 + $0x78] sm:$0xff] %v1596_v0 }
  0xab PF: > { %v1322_v1 = vld [vmem:[#allocation8] sm:$0xff]   ;;  %v1323_v2 = vld [vmem:[#allocation8 + $0x8] sm:$0xff]   ;;  %v1324_v3 = vld [vmem:[#allocation8 + $0x10] sm:$0xff]   ;;  %s2159_s9 = sld [smem:[#allocation16_spill]] }
  0xac   : > { %1110 = vmatprep.subr.bf16.mxu0 %v1322_v1  ;;  %v1325_v4 = vld [vmem:[#allocation8 + $0x18] sm:$0xff]   ;;  %v1330_v5 = vld [vmem:[%s1914_s13] sm:$0xff]   ;;  %v1327_v7 = vld [vmem:[#allocation8 + $0x28] sm:$0xff]  }
  0xad   : > { %1111 = vmatpush3.bf16.msra.mxu0 %v1322_v1  ;;  %1126 = vmatprep.mubr.bf16.mxu0 %v1330_v5  ;;  %v1326_v6 = vld [vmem:[#allocation8 + $0x20] sm:$0xff]   ;;  %v1328_v8 = vld [vmem:[#allocation8 + $0x30] sm:$0xff]   ;;  %v1329_v9 = vld [vmem:[#allocation8 + $0x38] sm:$0xff]  }
  0xae   : > { %1112 = vmatprep.subr.bf16.mxu0 %v1323_v2  ;;  %v1331_v10 = vld [vmem:[%s1914_s13 + $0x8] sm:$0xff]   ;;  %v1332_v11 = vld [vmem:[%s1914_s13 + $0x10] sm:$0xff]   ;;  %v1333_v12 = vld [vmem:[%s1914_s13 + $0x18] sm:$0xff]  }
  0xaf   : > { %v1334_v13 = vld [vmem:[%s1914_s13 + $0x20] sm:$0xff]   ;;  %v1335_v14 = vld [vmem:[%s1914_s13 + $0x28] sm:$0xff]   ;;  %v1336_v15 = vld [vmem:[%s1914_s13 + $0x30] sm:$0xff]  }
  0xb0   : > { %v1337_v16 = vld [vmem:[%s1914_s13 + $0x38] sm:$0xff]   ;;  %v1338_v17 = vld [vmem:[%s1906_s15] sm:$0xff]   ;;  %v1339_v42 = vld [vmem:[%s1906_s15 + $0x8] sm:$0xff]  }
  0xb1   : > { %1113 = vmatpush3.bf16.msra.mxu0 %v1323_v2  ;;  %1158 = vmatprep.mubr.bf16.mxu1 %v1338_v17  ;;  %v1340_v43 = vld [vmem:[%s1906_s15 + $0x10] sm:$0xff]   ;;  %v1341_v44 = vld [vmem:[%s1906_s15 + $0x18] sm:$0xff]   ;;  %v1342_v45 = vld [vmem:[%s1906_s15 + $0x20] sm:$0xff]   ;;  %p1067_p5 = scmp.ne.s32.totalorder %s2159_s9, 1 }
  0xb2   : > { %1114 = vmatprep.subr.bf16.mxu0 %v1324_v3  ;;  %v1343_v46 = vld [vmem:[%s1906_s15 + $0x28] sm:$0xff]   ;;  %v1344_v47 = vld [vmem:[%s1906_s15 + $0x30] sm:$0xff]   ;;  %v1345_v48 = vld [vmem:[%s1906_s15 + $0x38] sm:$0xff]   ;;  %s2160_s8 = sld [smem:[#allocation24_spill]] (!%p1067_p5)  ;;  %s2161_s16 = sld [smem:[#allocation25_spill]] (!%p1067_p5) }
  0xb3   : > { %v564_v49 = vld [vmem:[#allocation2 + $0x10] sm:$0xff]  ;;  %v562_v50 = vld [vmem:[#allocation2] sm:$0xff]  ;;  %v565_v52 = vld [vmem:[#allocation2 + $0x18] sm:$0xff] }
  0xb4   : > { %v563_v55 = vld [vmem:[#allocation2 + $0x8] sm:$0xff]  ;;  %v568_v61 = vld [vmem:[#allocation2 + $0x30] sm:$0xff]  ;;  %v566_v62 = vld [vmem:[#allocation2 + $0x20] sm:$0xff] }
  0xb5   : > { %1115 = vmatpush3.bf16.msra.mxu0 %v1324_v3  ;;  %v569_v0 = vld [vmem:[#allocation2 + $0x38] sm:$0xff]  ;;  %v567_v3 = vld [vmem:[#allocation2 + $0x28] sm:$0xff] }
  0xb6   : > { %1116 = vmatprep.subr.bf16.mxu0 %v1325_v4 }
  0xb9   : > { %1117 = vmatpush3.bf16.msra.mxu0 %v1325_v4 }
  0xba   : > { %1118 = vmatprep.subr.bf16.mxu0 %v1326_v6 }
  0xbd   : > { %1119 = vmatpush3.bf16.msra.mxu0 %v1326_v6 }
  0xbe   : > { %1120 = vmatprep.subr.bf16.mxu0 %v1327_v7 }
  0xc1   : > { %1121 = vmatpush3.bf16.msra.mxu0 %v1327_v7 }
  0xc2   : > { %1122 = vmatprep.subr.bf16.mxu0 %v1328_v8 }
  0xc5   : > { %1123 = vmatpush3.bf16.msra.mxu0 %v1328_v8 }
  0xc6   : > { %1124 = vmatprep.subr.bf16.mxu0 %v1329_v9 }
  0xc9   : > { %1125 = vmatpush3.bf16.msra.mxu0 %v1329_v9  ;;  %v572_v9 = vld [vmem:[#allocation2 + $0x50] sm:$0xff] }
  0xcc   : > { %1127 = vmatmul.mubr.bf16.vlgmr.msra.gmra.mrb[0].mxu0 %v1331_v10  ;;  %v570_v10 = vld [vmem:[#allocation2 + $0x40] sm:$0xff] }
  0xcd   : > { %1130 = vmatprep.mubr.bf16.mxu0 %v1332_v11 }
  0xd4   : > { %1131 = vmatmul.mubr.bf16.gmra.mrb[4].mxu0 %v1333_v12  ;;  %v573_v12 = vld [vmem:[#allocation2 + $0x58] sm:$0xff] }
  0xd5   : > { %1134 = vmatprep.mubr.bf16.mxu0 %v1334_v13 }
  0xdc   : > { %1135 = vmatmul.mubr.bf16.gmra.mrb[8].mxu0 %v1335_v14 }
  0xdd   : > { %1138 = vmatprep.mubr.bf16.mxu0 %v1336_v15  ;;  %v571_v15 = vld [vmem:[#allocation2 + $0x48] sm:$0xff] }
  0xe4   : > { %1139 = vmatmul.mubr.bf16.gmra.mrb[12].mxu0 %v1337_v16 }
 0x19f   : > { %v1128_v18 = vpop.f32.mrb[0].mxu0 }
 0x1a0   : > { %v499_v19 = vpop.f32.mrb[1].mxu0 }
 0x1a1   : > { %v1129_v20 = vpop.f32.mrb[2].mxu0 }
 0x1a2   : > { %v595_v21 = vpack.c.bf16 %v1129_v20, %v1128_v18  ;;  %v502_v22 = vpop.f32.mrb[3].mxu0 }
 0x1a3   : > { %v594_v23 = vpack.c.bf16 %v502_v22, %v499_v19  ;;  %v574_v22 = vld [vmem:[#allocation2 + $0x60] sm:$0xff] }
 0x1a5   : > { %1142 = vmatprep.subr.bf16.mxu1 %v594_v23 }
 0x1a6   : > { %1143 = vmatpush3.bf16.msra.mxu1 %v594_v23 }
 0x1a7   : > { %v1132_v24 = vpop.f32.mrb[4].mxu0  ;;  %1144 = vmatprep.subr.bf16.mxu1 %v595_v21 }
 0x1a8   : > { %v515_v25 = vpop.f32.mrb[5].mxu0 }
 0x1a9   : > { %v1133_v26 = vpop.f32.mrb[6].mxu0 }
 0x1aa   : > { %v597_v27 = vpack.c.bf16 %v1133_v26, %v1132_v24  ;;  %v518_v28 = vpop.f32.mrb[7].mxu0  ;;  %1145 = vmatpush3.bf16.msra.mxu1 %v595_v21  ;;  %v576_v21 = vld [vmem:[#allocation2 + $0x70] sm:$0xff]  ;;  %v577_v24 = vld [vmem:[#allocation2 + $0x78] sm:$0xff] }
 0x1ab   : > { %v596_v29 = vpack.c.bf16 %v518_v28, %v515_v25 }
 0x1ad   : > { %1146 = vmatprep.subr.bf16.mxu1 %v596_v29 }
 0x1ae   : > { %1147 = vmatpush3.bf16.msra.mxu1 %v596_v29 }
 0x1af   : > { %v1136_v30 = vpop.f32.mrb[8].mxu0  ;;  %1148 = vmatprep.subr.bf16.mxu1 %v597_v27 }
 0x1b0   : > { %v531_v31 = vpop.f32.mrb[9].mxu0 }
 0x1b1   : > { %v1137_v32 = vpop.f32.mrb[10].mxu0 }
 0x1b2   : > { %v599_v33 = vpack.c.bf16 %v1137_v32, %v1136_v30  ;;  %v534_v34 = vpop.f32.mrb[11].mxu0  ;;  %1149 = vmatpush3.bf16.msra.mxu1 %v597_v27  ;;  %v575_v27 = vld [vmem:[#allocation2 + $0x68] sm:$0xff] }
 0x1b3   : > { %v598_v35 = vpack.c.bf16 %v534_v34, %v531_v31  ;;  %v1950_v34 = vld [vmem:[%s2160_s8] ss:$0 sm:$0xff] (!%p1067_p5) }
 0x1b5   : > { %1150 = vmatprep.subr.bf16.mxu1 %v598_v35 }
 0x1b6   : > { %1151 = vmatpush3.bf16.msra.mxu1 %v598_v35  ;;  %v1955_v35 = vld [vmem:[%s2161_s16] ss:$0 sm:$0xff] (!%p1067_p5) }
 0x1b7   : > { %v1140_v36 = vpop.f32.mrb[12].mxu0  ;;  %1152 = vmatprep.subr.bf16.mxu1 %v599_v33 }
 0x1b8   : > { %v547_v37 = vpop.f32.mrb[13].mxu0 }
 0x1b9   : > { %v1141_v38 = vpop.f32.mrb[14].mxu0 }
 0x1ba   : > { %v601_v39 = vpack.c.bf16 %v1141_v38, %v1140_v36  ;;  %v550_v40 = vpop.f32.mrb[15].mxu0  ;;  %1153 = vmatpush3.bf16.msra.mxu1 %v599_v33 }
 0x1bb   : > { %v600_v41 = vpack.c.bf16 %v550_v40, %v547_v37 }
 0x1bd   : > { %1154 = vmatprep.subr.bf16.mxu1 %v600_v41 }
 0x1be   : > { %1155 = vmatpush3.bf16.msra.mxu1 %v600_v41 }
 0x1bf   : > { %1156 = vmatprep.subr.bf16.mxu1 %v601_v39 }
 0x1c2   : > { %1157 = vmatpush3.bf16.msra.mxu1 %v601_v39 }
 0x1c5   : > { %1159 = vmatmul.mubr.bf16.vlgmr.msra.gmra.mrb[0].mxu1 %v1339_v42 }
 0x1c6   : > { %1162 = vmatprep.mubr.bf16.mxu1 %v1340_v43 }
 0x1cd   : > { %1163 = vmatmul.mubr.bf16.gmra.mrb[4].mxu1 %v1341_v44 }
 0x1ce   : > { %1166 = vmatprep.mubr.bf16.mxu1 %v1342_v45 }
 0x1d5   : > { %1167 = vmatmul.mubr.bf16.gmra.mrb[8].mxu1 %v1343_v46 }
 0x1d6   : > { %1170 = vmatprep.mubr.bf16.mxu1 %v1344_v47 }
 0x1dd   : > { %1171 = vmatmul.mubr.bf16.gmra.mrb[12].mxu1 %v1345_v48 }
 0x298   : > { %v1160_v51 = vpop.f32.mrb[0].mxu1 }
 0x299   : > { %v749_v53 = vadd.f32 %v1160_v51, %v564_v49  ;;  %v684_v54 = vpop.f32.mrb[1].mxu1 }
 0x29a   : > { %v747_v56 = vadd.f32 %v684_v54, %v562_v50  ;;  %v1161_v57 = vpop.f32.mrb[2].mxu1 }
 0x29b   : > { %765 = vst [vmem:[#allocation2 + $0x10] sm:$0xff] %v749_v53  ;;  %v750_v58 = vadd.f32 %v1161_v57, %v565_v52  ;;  %v687_v59 = vpop.f32.mrb[3].mxu1 }
 0x29c   : > { %763 = vst [vmem:[#allocation2] sm:$0xff] %v747_v56  ;;  %v748_v60 = vadd.f32 %v687_v59, %v563_v55 }
 0x29d   : > { %766 = vst [vmem:[#allocation2 + $0x18] sm:$0xff] %v750_v58 }
 0x29e   : > { %764 = vst [vmem:[#allocation2 + $0x8] sm:$0xff] %v748_v60 }
 0x2a0   : > { %v1164_v63 = vpop.f32.mrb[4].mxu1 }
 0x2a1   : > { %v753_v1 = vadd.f32 %v1164_v63, %v568_v61  ;;  %v700_v2 = vpop.f32.mrb[5].mxu1 }
 0x2a2   : > { %v751_v4 = vadd.f32 %v700_v2, %v566_v62  ;;  %v1165_v5 = vpop.f32.mrb[6].mxu1  ;;  %v785_v38 = vld [vmem:[#allocation2 + $0x10] sm:$0xff] (!%p1067_p5) }
 0x2a3   : > { %769 = vst [vmem:[#allocation2 + $0x30] sm:$0xff] %v753_v1  ;;  %v754_v6 = vadd.f32 %v1165_v5, %v569_v0  ;;  %v703_v7 = vpop.f32.mrb[7].mxu1  ;;  %v783_v33 = vld [vmem:[#allocation2] sm:$0xff] (!%p1067_p5)  ;;  %v808_v41 = vadd.f32 (!%p1067_p5), %v1950_v34, %v785_v38 }
 0x2a4   : > { %767 = vst [vmem:[#allocation2 + $0x20] sm:$0xff] %v751_v4  ;;  %v752_v8 = vadd.f32 %v703_v7, %v567_v3  ;;  %v806_v36 = vadd.f32 (!%p1067_p5), %v1950_v34, %v783_v33  ;;  %v786_v39 = vld [vmem:[#allocation2 + $0x18] sm:$0xff] (!%p1067_p5) }
 0x2a5   : > { %770 = vst [vmem:[#allocation2 + $0x38] sm:$0xff] %v754_v6  ;;  %v784_v37 = vld [vmem:[#allocation2 + $0x8] sm:$0xff] (!%p1067_p5)  ;;  %v809_v42 = vadd.f32 (!%p1067_p5), %v1950_v34, %v786_v39  ;;  %vm824_vm2 = vcmp.gt.f32.partialorder (!%p1067_p5), %v808_v41, 0.0  ;;  %v847_v49 = vmul.f32 (!%p1067_p5), %v1955_v35, %v808_v41 }
 0x2a6   : > { %768 = vst [vmem:[#allocation2 + $0x28] sm:$0xff] %v752_v8  ;;  %v807_v40 = vadd.f32 (!%p1067_p5), %v1950_v34, %v784_v37  ;;  %vm822_vm0 = vcmp.gt.f32.partialorder (!%p1067_p5), %v806_v36, 0.0  ;;  %v845_v45 = vmul.f32 (!%p1067_p5), %v1955_v35, %v806_v36 }
 0x2a7   : > { %vm825_vm3 = vcmp.gt.f32.partialorder (!%p1067_p5), %v809_v42, 0.0  ;;  %v848_v53 = vmul.f32 (!%p1067_p5), %v1955_v35, %v809_v42  ;;  %v863_v58 = vsel (!%p1067_p5), %vm824_vm2, %v808_v41, %v847_v49 }
 0x2a8   : > { %v1168_v11 = vpop.f32.mrb[8].mxu1  ;;  %vm823_vm1 = vcmp.gt.f32.partialorder (!%p1067_p5), %v807_v40, 0.0  ;;  %v846_v48 = vmul.f32 (!%p1067_p5), %v1955_v35, %v807_v40  ;;  %v861_v52 = vsel (!%p1067_p5), %vm822_vm0, %v806_v36, %v845_v45  ;;  %879 = vst [vmem:[%s1927_s5 + $0x10] sm:$0xff] (!%p1067_p5), %v863_v58 }
 0x2a9   : > { %v757_v13 = vadd.f32 %v1168_v11, %v572_v9  ;;  %v716_v14 = vpop.f32.mrb[9].mxu1  ;;  %877 = vst [vmem:[%s1927_s5] sm:$0xff] (!%p1067_p5), %v861_v52  ;;  %v864_v60 = vsel (!%p1067_p5), %vm825_vm3, %v809_v42, %v848_v53 }
 0x2aa   : > { %v755_v16 = vadd.f32 %v716_v14, %v570_v10  ;;  %v1169_v17 = vpop.f32.mrb[10].mxu1  ;;  %v789_v50 = vld [vmem:[#allocation2 + $0x30] sm:$0xff] (!%p1067_p5)  ;;  %v862_v57 = vsel (!%p1067_p5), %vm823_vm1, %v807_v40, %v846_v48  ;;  %880 = vst [vmem:[%s1927_s5 + $0x18] sm:$0xff] (!%p1067_p5), %v864_v60 }
 0x2ab   : > { %773 = vst [vmem:[#allocation2 + $0x50] sm:$0xff] %v757_v13  ;;  %v758_v18 = vadd.f32 %v1169_v17, %v573_v12  ;;  %v719_v19 = vpop.f32.mrb[11].mxu1  ;;  %v787_v43 = vld [vmem:[#allocation2 + $0x20] sm:$0xff] (!%p1067_p5)  ;;  %878 = vst [vmem:[%s1927_s5 + $0x8] sm:$0xff] (!%p1067_p5), %v862_v57  ;;  %v812_v62 = vadd.f32 (!%p1067_p5), %v1950_v34, %v789_v50 }
 0x2ac   : > { %771 = vst [vmem:[#allocation2 + $0x40] sm:$0xff] %v755_v16  ;;  %v756_v20 = vadd.f32 %v719_v19, %v571_v15  ;;  %v810_v46 = vadd.f32 (!%p1067_p5), %v1950_v34, %v787_v43  ;;  %v790_v51 = vld [vmem:[#allocation2 + $0x38] sm:$0xff] (!%p1067_p5) }
 0x2ad   : > { %774 = vst [vmem:[#allocation2 + $0x58] sm:$0xff] %v758_v18  ;;  %v788_v44 = vld [vmem:[#allocation2 + $0x28] sm:$0xff] (!%p1067_p5)  ;;  %v813_v63 = vadd.f32 (!%p1067_p5), %v1950_v34, %v790_v51  ;;  %vm828_vm6 = vcmp.gt.f32.partialorder (!%p1067_p5), %v812_v62, 0.0  ;;  %v851_v5 = vmul.f32 (!%p1067_p5), %v1955_v35, %v812_v62 }
 0x2ae   : > { %772 = vst [vmem:[#allocation2 + $0x48] sm:$0xff] %v756_v20  ;;  %v811_v47 = vadd.f32 (!%p1067_p5), %v1950_v34, %v788_v44  ;;  %vm826_vm4 = vcmp.gt.f32.partialorder (!%p1067_p5), %v810_v46, 0.0  ;;  %v849_v59 = vmul.f32 (!%p1067_p5), %v1955_v35, %v810_v46 }
 0x2af   : > { %vm829_vm7 = vcmp.gt.f32.partialorder (!%p1067_p5), %v813_v63, 0.0  ;;  %v852_v8 = vmul.f32 (!%p1067_p5), %v1955_v35, %v813_v63  ;;  %v867_v12 = vsel (!%p1067_p5), %vm828_vm6, %v812_v62, %v851_v5 }
 0x2b0   : > { %v1172_v23 = vpop.f32.mrb[12].mxu1  ;;  %782 = sbr.rel (%p1067_p5) target bundleno = 708 (0x2c4), region = 60  ;;  %vm827_vm5 = vcmp.gt.f32.partialorder (!%p1067_p5), %v811_v47, 0.0  ;;  %v850_v61 = vmul.f32 (!%p1067_p5), %v1955_v35, %v811_v47  ;;  %v865_v0 = vsel (!%p1067_p5), %vm826_vm4, %v810_v46, %v849_v59  ;;  %883 = vst [vmem:[%s1927_s5 + $0x30] sm:$0xff] (!%p1067_p5), %v867_v12 }
 0x2b1   : > { %v761_v25 = vadd.f32 %v1172_v23, %v576_v21  ;;  %v732_v26 = vpop.f32.mrb[13].mxu1  ;;  %881 = vst [vmem:[%s1927_s5 + $0x20] sm:$0xff] (!%p1067_p5), %v865_v0  ;;  %v868_v15 = vsel (!%p1067_p5), %vm829_vm7, %v813_v63, %v852_v8 }
 0x2b2   : > { %v759_v28 = vadd.f32 %v732_v26, %v574_v22  ;;  %v1173_v29 = vpop.f32.mrb[14].mxu1  ;;  %v793_v56 = vld [vmem:[#allocation2 + $0x50] sm:$0xff] (!%p1067_p5)  ;;  %v866_v4 = vsel (!%p1067_p5), %vm827_vm5, %v811_v47, %v850_v61  ;;  %884 = vst [vmem:[%s1927_s5 + $0x38] sm:$0xff] (!%p1067_p5), %v868_v15 }
 0x2b3   : > { %777 = vst [vmem:[#allocation2 + $0x70] sm:$0xff] %v761_v25  ;;  %v762_v30 = vadd.f32 %v1173_v29, %v577_v24  ;;  %v735_v31 = vpop.f32.mrb[15].mxu1  ;;  %v791_v54 = vld [vmem:[#allocation2 + $0x40] sm:$0xff] (!%p1067_p5)  ;;  %v816_v3 = vadd.f32 (!%p1067_p5), %v1950_v34, %v793_v56  ;;  %882 = vst [vmem:[%s1927_s5 + $0x28] sm:$0xff] (!%p1067_p5), %v866_v4 }
 0x2b4   : > { %775 = vst [vmem:[#allocation2 + $0x60] sm:$0xff] %v759_v28  ;;  %v760_v32 = vadd.f32 %v735_v31, %v575_v27  ;;  %v814_v1 = vadd.f32 (!%p1067_p5), %v1950_v34, %v791_v54  ;;  %v794_v6 = vld [vmem:[#allocation2 + $0x58] sm:$0xff] (!%p1067_p5) }
 0x2b5   : > { %778 = vst [vmem:[#allocation2 + $0x78] sm:$0xff] %v762_v30  ;;  %v792_v55 = vld [vmem:[#allocation2 + $0x48] sm:$0xff] (!%p1067_p5)  ;;  %vm832_vm10 = vcmp.gt.f32.partialorder (!%p1067_p5), %v816_v3, 0.0  ;;  %v855_v14 = vmul.f32 (!%p1067_p5), %v1955_v35, %v816_v3  ;;  %v817_v17 = vadd.f32 (!%p1067_p5), %v1950_v34, %v794_v6 }
 0x2b6   : > { %776 = vst [vmem:[#allocation2 + $0x68] sm:$0xff] %v760_v32  ;;  %v815_v2 = vadd.f32 (!%p1067_p5), %v1950_v34, %v792_v55  ;;  %vm830_vm8 = vcmp.gt.f32.partialorder (!%p1067_p5), %v814_v1, 0.0  ;;  %v853_v9 = vmul.f32 (!%p1067_p5), %v1955_v35, %v814_v1 }
 0x2b7   : > { %v871_v20 = vsel %vm832_vm10, %v816_v3, %v855_v14  ;;  %vm833_vm11 = vcmp.gt.f32.partialorder %v817_v17, 0.0  ;;  %v856_v24 = vmul.f32 %v1955_v35, %v817_v17 }
 0x2b8   : > { %vm831_vm9 = vcmp.gt.f32.partialorder %v815_v2, 0.0  ;;  %v854_v13 = vmul.f32 %v1955_v35, %v815_v2  ;;  %v869_v16 = vsel %vm830_vm8, %v814_v1, %v853_v9  ;;  %887 = vst [vmem:[%s1927_s5 + $0x50] sm:$0xff] %v871_v20 }
 0x2b9   : > { %885 = vst [vmem:[%s1927_s5 + $0x40] sm:$0xff] %v869_v16  ;;  %v872_v28 = vsel %vm833_vm11, %v817_v17, %v856_v24 }
 0x2ba   : > { %v797_v11 = vld [vmem:[#allocation2 + $0x70] sm:$0xff]  ;;  %v870_v19 = vsel %vm831_vm9, %v815_v2, %v854_v13  ;;  %888 = vst [vmem:[%s1927_s5 + $0x58] sm:$0xff] %v872_v28 }
 0x2bb   : > { %v795_v7 = vld [vmem:[#allocation2 + $0x60] sm:$0xff]  ;;  %v820_v22 = vadd.f32 %v1950_v34, %v797_v11  ;;  %886 = vst [vmem:[%s1927_s5 + $0x48] sm:$0xff] %v870_v19 }
 0x2bc   : > { %v818_v18 = vadd.f32 %v1950_v34, %v795_v7  ;;  %v798_v23 = vld [vmem:[#allocation2 + $0x78] sm:$0xff] }
 0x2bd   : > { %v796_v10 = vld [vmem:[#allocation2 + $0x68] sm:$0xff]  ;;  %vm836_vm14 = vcmp.gt.f32.partialorder %v820_v22, 0.0  ;;  %v859_v27 = vmul.f32 %v1955_v35, %v820_v22  ;;  %v821_v30 = vadd.f32 %v1950_v34, %v798_v23 }
 0x2be   : > { %v819_v21 = vadd.f32 %v1950_v34, %v796_v10  ;;  %vm834_vm12 = vcmp.gt.f32.partialorder %v818_v18, 0.0  ;;  %v857_v25 = vmul.f32 %v1955_v35, %v818_v18 }
 0x2bf   : > { %v875_v32 = vsel %vm836_vm14, %v820_v22, %v859_v27  ;;  %vm837_vm15 = vcmp.gt.f32.partialorder %v821_v30, 0.0  ;;  %v860_v33 = vmul.f32 %v1955_v35, %v821_v30 }
 0x2c0   : > { %vm835_vm13 = vcmp.gt.f32.partialorder %v819_v21, 0.0  ;;  %v858_v26 = vmul.f32 %v1955_v35, %v819_v21  ;;  %v873_v29 = vsel %vm834_vm12, %v818_v18, %v857_v25  ;;  %891 = vst [vmem:[%s1927_s5 + $0x70] sm:$0xff] %v875_v32 }
 0x2c1   : > { %889 = vst [vmem:[%s1927_s5 + $0x60] sm:$0xff] %v873_v29  ;;  %v876_v36 = vsel %vm837_vm15, %v821_v30, %v860_v33 }
 0x2c2   : > { %v874_v31 = vsel %vm835_vm13, %v819_v21, %v858_v26  ;;  %892 = vst [vmem:[%s1927_s5 + $0x78] sm:$0xff] %v876_v36 }
 0x2c3   : > { %890 = vst [vmem:[%s1927_s5 + $0x68] sm:$0xff] %v874_v31 }
 0x2c4 PF: > { %s2162_s3 = sld [smem:[#allocation17_spill]]  ;;  %s2164_s11 = sld [smem:[#allocation20_spill]] }
 0x2c5   : > { %s2165_s28 = sld [smem:[#allocation26_spill]]  ;;  %s907_s19 = sshll.u32 %s1927_s5, 4  ;;  %s2013_s19 = int_to_ptr.vmem [resolvable:$true] %s907_s19 }
 0x2c6   : > { %s2017_s18 = scalar_lea.sflag [#allocation5], %s310_s17  ;;  %s1434_s8 = scalar_lea.vmem %s2013_s19, 2048 }
 0x2c7   : > { %p1435_p2 = scmp.ne.s32.totalorder %s2013_s19, %s1434_s8  ;;  %s1597_s15 = smov [#allocation9]  }
 0x2c8   : > { %s1438_s27 = sshll.u32 %s1597_s15, 4  ;;  %s1439_s27 = int_to_ptr.vmem [resolvable:$false] %s1438_s27 }
 0x2c9   : > { %s1440_s16 = scalar_lea.vmem %s1439_s27, 4096  ;;  %p1441_p4 = scmp.lt.s32.totalorder %s2013_s19, %s1439_s27 }
 0x2ca   : > { %s1077_s14 = sshll.u32 %s2162_s3, 11  ;;  %p2167_p10 = scmp.ne.s32.totalorder %s2164_s11, 0 }
 0x2cb   : > { %s2166_s7 = smov %s2165_s28  ;;  %s2010_s9 = scalar_lea.hbm %s2165_s28, %s1077_s14 }
 0x2cc   : > { %p1436_p0 = pnand %p1435_p2, %p2167_p10  ;;  %p1442_p8 = scmp.lt.s32.totalorder %s1440_s16, %s1434_s8 }
 0x2ce   : > { %p1437_p11 = pneg %p1436_p0  ;;  %p1443_p12 = por %p1442_p8, %p1441_p4 }
 0x2d0   : > { %p1444_p13 = pnand %p1443_p12, %p1437_p11 }
 0x2d2   : > { %1447 = shalt.err (!%p1444_p13)
}
 0x2d3   : > { %s1448_s17 = scalar_lea.hbm %s2010_s9, 2048  ;;  %s1452_s4 = scalar_lea.hbm %s2166_s7, 4096 }
 0x2d4   : > { %p1449_p6 = scmp.ne.s32.totalorder %s2010_s9, %s1448_s17  ;;  %p1453_p3 = scmp.lt.u32.totalorder %s2010_s9, %s2166_s7 }
 0x2d5   : > { %p1454_p9 = scmp.lt.u32.totalorder %s1452_s4, %s1448_s17  ;;  %p1456_p2 = scmp.lt.u32.totalorder %s1448_s17, %s2010_s9 }
 0x2d6   : > { %p1450_p7 = pnand %p1449_p6, %p2167_p10 }
 0x2d7   : > { %p1455_p5 = por %p1454_p9, %p1453_p3 }
 0x2d8   : > { %p1451_p1 = pneg %p1450_p7 }
 0x2d9   : > { %p1457_p0 = por %p1456_p2, %p1455_p5 }
 0x2db   : > { %p1458_p11 = pnand %p1457_p0, %p1451_p1 }
 0x2dd   : > { %1461 = shalt.err (!%p1458_p11)
}
 0x2de   : > { %s1598_s10 = smov 128   ;;  %s1599_s28 = smov 8  }
 0x2df   : > { %1182 = dma.vmem_to_hbm [thread:$0]  (%p2167_p10), %s2013_s19, 2048, %s2010_s9, %s2017_s18, %s1598_s10, %s1598_s10, %s1599_s28  }
 0x2e0 PF: > { %s2168_s8 = sld [smem:[#allocation14_spill]]  ;;  %s2169_s15 = sld [smem:[#allocation21_spill]] }
 0x2e1   : > { %p1202_p4 = scmp.ge.s32.totalorder %s1588_s6, 2 }
 0x2e6   : > { %s922_s27 = sand.u32 1, %s2168_s8   ;;  %p2170_p8 = scmp.ne.s32.totalorder %s2169_s15, 0 }
 0x2e7   : > { %s923_s16 = scalar_lea.sflag [#allocation5], %s922_s27 }
 0x2e8   : > { %p1196_p12 = pnand %p1202_p4, %p2170_p8 }
 0x2ea   : > { %1531 = dma.done.wait (!%p1196_p12), %s923_s16, 2048  }
 0x2eb   : > { %1533 = vsyncadd (!%p1196_p12), %s923_s16, 4294965248  ;;  %s24_s6 = sadd.s32 1, %s1588_s6   ;;  %s2172_s18 = sld [smem:[#allocation15_spill]] }
 0x2ec   : > { %p2046_p13 = scmp.ge.s32.totalorder %s24_s6, 6   ;;  %s2173_s11 = sld [smem:[#allocation22_spill]] }
 0x2ed   : > { %s2174_s9 = smov %s2192_s24  ;;  %s2175_s19 = smov %s1544_s20 }
 0x2ee   : > { %s2176_s20 = smov %s1793_s21  ;;  %s2177_s21 = smov %s1552_s22 }
 0x2ef   : > { %s2178_s22 = smov %s1556_s23  ;;  %s2179_s23 = smov %s1851_s2 }
 0x2f0   : > { %s2180_s24 = smov %s1564_s25  ;;  %s2181_s25 = smov %s1568_s26 }
 0x2f1   : > { %s2182_s26 = smov %s1796_s12  ;;  %s2183_s27 = smov %s1580_s29 }
 0x2f2   : > { %s2184_s28 = smov %s1584_s30  ;;  %s2185_s29 = smov %s2173_s11 }
 0x2f3   : > { %s2186_s30 = smov %s2174_s9  ;;  %23 = sbr.rel (!%p2046_p13) target bundleno = 17 (0x11), region = 110 }
 0x2fa   :  { %928 = vsyncpa [#allocation4], 1 }
 0x2fb   :  { %930 = vsyncpa [#allocation4 + $0x1], 1 }
 0x2fc   :  { %931 = vsyncpa [#allocation7], 1 }
 0x2fd   :  { %933 = vsyncpa [#allocation7 + $0x1], 1 }
 0x2fe   :  { %934 = vsyncpa [#allocation5], 1 }
 0x2ff   :  { %936 = vsyncpa [#allocation5 + $0x1], 1 }

</bundles_post_ra>
